<compile_context>
chip_gen: v7x
topology: tpu7x:2x2x1
jax: 0.10.0
libtpu: 0.0.40
codegen_flags: <defaults>
</compile_context>

<pallas_src>
import jax
import jax.numpy as jnp
from jax.experimental import pallas as pl
from jax.experimental.pallas import tpu as pltpu

NUM_EMBED = 64
NUM_HEAD = 4
HEAD_DIM = NUM_EMBED // NUM_HEAD
SEQ_LEN = 32            # size of the tril buffer in the PyTorch module
EPS = 1e-5              # nn.LayerNorm default eps
NEG_INF = -1e30         # large finite negative for the additive causal mask


# ----------------------------------------------------------------------------
# Fused Pallas kernel: one TransformerBlock forward for one batch element
# ----------------------------------------------------------------------------
def transformer_block_kernel(x_ref, ln_g_ref, ln_b_ref,
                             wqkv_ref, wo_ref, bo_ref,
                             w1_ref, b1_ref, w2_ref, b2_ref,
                             o_ref):
    f32, bf16 = jnp.float32, jnp.bfloat16
    T, E = x_ref.shape

    x = x_ref[...].astype(f32)                       # (T, E) residual stream, f32
    g = ln_g_ref[...]                                # (1, E) shared LN gamma
    b = ln_b_ref[...]                                # (1, E) shared LN beta

    # --- additive causal mask, built once (0 on/below diagonal, -1e30 above) ---
    r = jax.lax.broadcasted_iota(jnp.int32, (T, T), 0)
    c = jax.lax.broadcasted_iota(jnp.int32, (T, T), 1)
    mask_bias = jnp.where(c <= r, 0.0, NEG_INF).astype(f32)

    # NB: PyTorch scales by num_channels**-0.5 where num_channels == num_embed (not head_dim)
    scale = jnp.float32(float(E) ** -0.5)

    def layer_norm(v):
        mu = jnp.mean(v, axis=-1, keepdims=True)
        var = jnp.mean((v - mu) ** 2, axis=-1, keepdims=True)
        return (v - mu) * jax.lax.rsqrt(var + EPS) * g + b

    # --- multi-head causal self-attention:  x = x + W_o(concat_h softmax(qk^T)v) + b_o ---
    n1 = layer_norm(x).astype(bf16)
    # fused QKV projection: one (T,E)@(E,3E) MXU matmul
    qkv = jnp.dot(n1, wqkv_ref[...], preferred_element_type=f32)       # (T, 3E) f32
    q = (qkv[:, :E] * scale).astype(bf16)
    k = qkv[:, E:2 * E].astype(bf16)
    v = qkv[:, 2 * E:3 * E].astype(bf16)

    heads = []
    for h in range(NUM_HEAD):                        # static 4-head loop (HD=16, robust lowering)
        sl = slice(h * HEAD_DIM, (h + 1) * HEAD_DIM)
        # q @ k^T without an explicit transpose (contract the last dims)
        s = jax.lax.dot_general(q[:, sl], k[:, sl],
                                (((1,), (1,)), ((), ())),
                                preferred_element_type=f32)            # (T, T)
        s = s + mask_bias
        m = jnp.max(s, axis=-1, keepdims=True)
        e = jnp.exp(s - m)
        denom = jnp.sum(e, axis=-1, keepdims=True)
        p = (e * pl.reciprocal(denom, approx=True)).astype(bf16)
        heads.append(jnp.dot(p, v[:, sl], preferred_element_type=f32))  # (T, HD)
    # concat heads once, then ONE (T,E)@(E,E) output projection
    attn = jnp.concatenate(heads, axis=-1).astype(bf16)                 # (T, E)
    x = x + jnp.dot(attn, wo_ref[...], preferred_element_type=f32) + bo_ref[...]

    # --- feed forward (pre-LN, shared LN params):  x = x + W2 relu(W1 LN(x) + b1) + b2 ---
    n2 = layer_norm(x).astype(bf16)
    h1 = jnp.dot(n2, w1_ref[...], preferred_element_type=f32) + b1_ref[...]
    h1 = jnp.maximum(h1, 0.0).astype(bf16)
    x = x + jnp.dot(h1, w2_ref[...], preferred_element_type=f32) + b2_ref[...]

    o_ref[...] = x.astype(o_ref.dtype)


# ----------------------------------------------------------------------------
# Wrapper
# ----------------------------------------------------------------------------
def transformer_block_forward(params, x):
    """Equivalent of TransformerBlock.forward: (B, T, E) -> (B, T, E)."""
    B, T, E = x.shape
    assert E == NUM_EMBED and T <= SEQ_LEN
    bf16 = jnp.bfloat16

    # pack wq|wk|wv into one (E, 3E) weight -> single fused QKV matmul in-kernel
    wqkv = jnp.concatenate([params["wq"], params["wk"], params["wv"]], axis=1).astype(bf16)

    args = (x.astype(jnp.float32),
            params["ln_g"], params["ln_b"],
            wqkv,
            params["wo"].astype(bf16), params["bo"],
            params["w1"].astype(bf16), params["b1"],
            params["w2"].astype(bf16), params["b2"])

    def const_spec(a):
        # weights/biases: full-array VMEM block, constant index -> fetched once, stays resident
        return pl.BlockSpec(a.shape, lambda bidx: (0, 0))

    in_specs = [pl.BlockSpec((None, T, E), lambda bidx: (bidx, 0, 0))]   # per-batch (T, E) slab
    in_specs += [const_spec(a) for a in args[1:]]
    out_specs = pl.BlockSpec((None, T, E), lambda bidx: (bidx, 0, 0))

    out = pl.pallas_call(
        transformer_block_kernel,
        out_shape=jax.ShapeDtypeStruct((B, T, E), jnp.float32),
        grid=(B,),
        in_specs=in_specs,
        out_specs=out_specs,
        compiler_params=pltpu.CompilerParams(
            dimension_semantics=("parallel",)),        # batch shards across v7x's 2 TCs
    )(*args)
    return out


# ----------------------------------------------------------------------------
# Parameters (PyTorch-equivalent layout: y = x @ W + b)
# ----------------------------------------------------------------------------
def init_params(key):
    def nrm(k, shape, scale=0.02):
        return (scale * jax.random.normal(k, shape)).astype(jnp.float32)

    ks = jax.random.split(key, 6)
    E, H4 = NUM_EMBED, 4 * NUM_EMBED
    return {
        "ln_g": jnp.ones((1, E), jnp.float32),
        "ln_b": jnp.zeros((1, E), jnp.float32),
        "wq": nrm(ks[0], (E, E)),        # bias=False in the PyTorch heads
        "wk": nrm(ks[1], (E, E)),
        "wv": nrm(ks[2], (E, E)),
        "wo": nrm(ks[3], (E, E)),
        "bo": jnp.zeros((1, E), jnp.float32),
        "w1": nrm(ks[4], (E, H4)),
        "b1": jnp.zeros((1, H4), jnp.float32),
        "w2": nrm(ks[5], (H4, E)),
        "b2": jnp.zeros((1, E), jnp.float32),
    }


# ----------------------------------------------------------------------------
# Pure-JAX f32 reference (numerical sanity check)
# ----------------------------------------------------------------------------
def reference_forward(params, x):
    B, T, E = x.shape
    H, HD = NUM_HEAD, HEAD_DIM

    def ln(v):
        mu = v.mean(-1, keepdims=True)
        var = ((v - mu) ** 2).mean(-1, keepdims=True)
        return (v - mu) * jax.lax.rsqrt(var + EPS) * params["ln_g"] + params["ln_b"]

    tril = jnp.tril(jnp.ones((T, T), bool))
    n1 = ln(x)
    q = (n1 @ params["wq"]).reshape(B, T, H, HD)
    k = (n1 @ params["wk"]).reshape(B, T, H, HD)
    v = (n1 @ params["wv"]).reshape(B, T, H, HD)
    s = jnp.einsum("bqhd,bkhd->bhqk", q, k) * (E ** -0.5)
    s = jnp.where(tril, s, -jnp.inf)
    p = jax.nn.softmax(s, axis=-1)
    o = jnp.einsum("bhqk,bkhd->bqhd", p, v).reshape(B, T, E)
    x = x + o @ params["wo"] + params["bo"]
    n2 = ln(x)
    h1 = jax.nn.relu(n2 @ params["w1"] + params["b1"])
    x = x + h1 @ params["w2"] + params["b2"]
    return x


if __name__ == "__main__":
    key = jax.random.PRNGKey(0)
    pkey, xkey = jax.random.split(key)
    params = init_params(pkey)

    B, T = 2, 8                                       # small shapes (T <= SEQ_LEN)
    x = jax.random.normal(xkey, (B, T, NUM_EMBED), jnp.float32)

    out = transformer_block_forward(params, x)
    out = jax.block_until_ready(out)

    assert out.shape == (B, T, NUM_EMBED) and out.dtype == jnp.float32
    assert bool(jnp.all(jnp.isfinite(out)))

    # Loose tolerance: kernel uses bf16 MXU operands + EUP approximate reciprocal.
    ref = reference_forward(params, x)
    err = float(jnp.max(jnp.abs(out - ref)))
    assert err < 5e-2, f"max abs error {err}"

    print("KERNEL_OK")
</pallas_src>

<mosaic_0001>
module attributes {stable_mosaic.version = 11 : i64} {
  func.func @transformer_block_kernel(%arg0: i32, %arg1: memref<1x8x64xf32, #tpu.memory_space<vmem>>, %arg2: memref<1x64xf32, #tpu.memory_space<vmem>>, %arg3: memref<1x64xf32, #tpu.memory_space<vmem>>, %arg4: memref<64x192xbf16, #tpu.memory_space<vmem>>, %arg5: memref<64x64xbf16, #tpu.memory_space<vmem>>, %arg6: memref<1x64xf32, #tpu.memory_space<vmem>>, %arg7: memref<64x256xbf16, #tpu.memory_space<vmem>>, %arg8: memref<1x256xf32, #tpu.memory_space<vmem>>, %arg9: memref<256x64xbf16, #tpu.memory_space<vmem>>, %arg10: memref<1x64xf32, #tpu.memory_space<vmem>>, %arg11: memref<1x8x64xf32, #tpu.memory_space<vmem>>) attributes {dimension_semantics = [#tpu.dimension_semantics<parallel>], iteration_bounds = array<i64: 2>, scalar_prefetch = 0 : i64, scratch_operands = 0 : i64, tpu.core_type = #tpu.core_type<tc>, window_params = [{transform_indices = @transform_0, window_bounds = array<i64: 1, 8, 64>}, {pipeline_mode = #tpu.pipeline_mode<synchronous>, transform_indices = @transform_1, window_bounds = array<i64: 1, 64>}, {pipeline_mode = #tpu.pipeline_mode<synchronous>, transform_indices = @transform_2, window_bounds = array<i64: 1, 64>}, {pipeline_mode = #tpu.pipeline_mode<synchronous>, transform_indices = @transform_3, window_bounds = array<i64: 64, 192>}, {pipeline_mode = #tpu.pipeline_mode<synchronous>, transform_indices = @transform_4, window_bounds = array<i64: 64, 64>}, {pipeline_mode = #tpu.pipeline_mode<synchronous>, transform_indices = @transform_5, window_bounds = array<i64: 1, 64>}, {pipeline_mode = #tpu.pipeline_mode<synchronous>, transform_indices = @transform_6, window_bounds = array<i64: 64, 256>}, {pipeline_mode = #tpu.pipeline_mode<synchronous>, transform_indices = @transform_7, window_bounds = array<i64: 1, 256>}, {pipeline_mode = #tpu.pipeline_mode<synchronous>, transform_indices = @transform_8, window_bounds = array<i64: 256, 64>}, {pipeline_mode = #tpu.pipeline_mode<synchronous>, transform_indices = @transform_9, window_bounds = array<i64: 1, 64>}, {transform_indices = @transform_10, window_bounds = array<i64: 1, 8, 64>}]} {
    %c0 = arith.constant 0 : index
    %c0_0 = arith.constant 0 : index
    %c0_1 = arith.constant 0 : index
    %0 = vector.load %arg1[%c0, %c0_0, %c0_1] : memref<1x8x64xf32, #tpu.memory_space<vmem>>, vector<1x8x64xf32>
    %1 = vector.shape_cast %0 : vector<1x8x64xf32> to vector<8x64xf32>
    %c0_2 = arith.constant 0 : index
    %c0_3 = arith.constant 0 : index
    %2 = vector.load %arg2[%c0_2, %c0_3] : memref<1x64xf32, #tpu.memory_space<vmem>>, vector<1x64xf32>
    %c0_4 = arith.constant 0 : index
    %c0_5 = arith.constant 0 : index
    %3 = vector.load %arg3[%c0_4, %c0_5] : memref<1x64xf32, #tpu.memory_space<vmem>>, vector<1x64xf32>
    %4 = tpu.iota {dimensions = array<i32: 0>} : vector<8x8xi32>
    %5 = tpu.iota {dimensions = array<i32: 1>} : vector<8x8xi32>
    %6 = arith.cmpi sle, %5, %4 : vector<8x8xi32>
    %cst = arith.constant 0.000000e+00 : f32
    %cst_6 = arith.constant -1.000000e+30 : f32
    %7 = vector.broadcast %cst : f32 to vector<8x8xf32>
    %8 = vector.broadcast %cst_6 : f32 to vector<8x8xf32>
    %9 = arith.select %6, %7, %8 : vector<8x8xi1>, vector<8x8xf32>
    %cst_7 = arith.constant dense<0.000000e+00> : vector<8xf32>
    %10 = vector.multi_reduction <add>, %1, %cst_7 [1] : vector<8x64xf32> to vector<8xf32>
    %11 = vector.shape_cast %10 : vector<8xf32> to vector<8x1xf32>
    %cst_8 = arith.constant 6.400000e+01 : f32
    %12 = vector.broadcast %cst_8 : f32 to vector<8x1xf32>
    %13 = arith.divf %11, %12 : vector<8x1xf32>
    %14 = vector.broadcast %13 : vector<8x1xf32> to vector<8x64xf32>
    %15 = arith.subf %1, %14 : vector<8x64xf32>
    %16 = arith.mulf %15, %15 : vector<8x64xf32>
    %cst_9 = arith.constant dense<0.000000e+00> : vector<8xf32>
    %17 = vector.multi_reduction <add>, %16, %cst_9 [1] : vector<8x64xf32> to vector<8xf32>
    %18 = vector.shape_cast %17 : vector<8xf32> to vector<8x1xf32>
    %cst_10 = arith.constant 6.400000e+01 : f32
    %19 = vector.broadcast %cst_10 : f32 to vector<8x1xf32>
    %20 = arith.divf %18, %19 : vector<8x1xf32>
    %21 = vector.broadcast %13 : vector<8x1xf32> to vector<8x64xf32>
    %22 = arith.subf %1, %21 : vector<8x64xf32>
    %cst_11 = arith.constant 9.99999974E-6 : f32
    %23 = vector.broadcast %cst_11 : f32 to vector<8x1xf32>
    %24 = arith.addf %20, %23 : vector<8x1xf32>
    %25 = math.rsqrt %24 : vector<8x1xf32>
    %26 = vector.broadcast %25 : vector<8x1xf32> to vector<8x64xf32>
    %27 = arith.mulf %22, %26 : vector<8x64xf32>
    %28 = vector.broadcast %2 : vector<1x64xf32> to vector<8x64xf32>
    %29 = arith.mulf %27, %28 : vector<8x64xf32>
    %30 = vector.broadcast %3 : vector<1x64xf32> to vector<8x64xf32>
    %31 = arith.addf %29, %30 : vector<8x64xf32>
    %32 = arith.truncf %31 : vector<8x64xf32> to vector<8x64xbf16>
    %c0_12 = arith.constant 0 : index
    %c0_13 = arith.constant 0 : index
    %33 = vector.load %arg4[%c0_12, %c0_13] : memref<64x192xbf16, #tpu.memory_space<vmem>>, vector<64x192xbf16>
    %cst_14 = arith.constant dense<0.000000e+00> : vector<8x192xf32>
    %34 = tpu.matmul %32, %33, %cst_14 {dimension_numbers = #tpu.dot_dimension_numbers<[1], [0], [0], [1], [0, 0, 1, 1], [], []>} : vector<8x64xbf16>, vector<64x192xbf16>, vector<8x192xf32> -> vector<8x192xf32>
    %35 = vector.extract_strided_slice %34 {offsets = [0, 0], sizes = [8, 64], strides = [1, 1]} : vector<8x192xf32> to vector<8x64xf32>
    %cst_15 = arith.constant 1.250000e-01 : f32
    %36 = vector.broadcast %cst_15 : f32 to vector<8x64xf32>
    %37 = arith.mulf %35, %36 : vector<8x64xf32>
    %38 = arith.truncf %37 : vector<8x64xf32> to vector<8x64xbf16>
    %39 = vector.extract_strided_slice %34 {offsets = [0, 64], sizes = [8, 64], strides = [1, 1]} : vector<8x192xf32> to vector<8x64xf32>
    %40 = arith.truncf %39 : vector<8x64xf32> to vector<8x64xbf16>
    %41 = vector.extract_strided_slice %34 {offsets = [0, 128], sizes = [8, 64], strides = [1, 1]} : vector<8x192xf32> to vector<8x64xf32>
    %42 = arith.truncf %41 : vector<8x64xf32> to vector<8x64xbf16>
    %43 = vector.extract_strided_slice %38 {offsets = [0, 0], sizes = [8, 16], strides = [1, 1]} : vector<8x64xbf16> to vector<8x16xbf16>
    %44 = vector.extract_strided_slice %40 {offsets = [0, 0], sizes = [8, 16], strides = [1, 1]} : vector<8x64xbf16> to vector<8x16xbf16>
    %cst_16 = arith.constant dense<0.000000e+00> : vector<8x8xf32>
    %45 = tpu.matmul %43, %44, %cst_16 {dimension_numbers = #tpu.dot_dimension_numbers<[1], [1], [0], [0], [0, 0, 1, 0], [], []>} : vector<8x16xbf16>, vector<8x16xbf16>, vector<8x8xf32> -> vector<8x8xf32>
    %46 = arith.addf %45, %9 : vector<8x8xf32>
    %cst_17 = arith.constant dense<0xFF800000> : vector<8xf32>
    %47 = vector.multi_reduction <maximumf>, %46, %cst_17 [1] : vector<8x8xf32> to vector<8xf32>
    %48 = vector.shape_cast %47 : vector<8xf32> to vector<8x1xf32>
    %49 = vector.broadcast %48 : vector<8x1xf32> to vector<8x8xf32>
    %50 = arith.subf %46, %49 : vector<8x8xf32>
    %51 = math.exp %50 : vector<8x8xf32>
    %cst_18 = arith.constant dense<0.000000e+00> : vector<8xf32>
    %52 = vector.multi_reduction <add>, %51, %cst_18 [1] : vector<8x8xf32> to vector<8xf32>
    %53 = vector.shape_cast %52 : vector<8xf32> to vector<8x1xf32>
    %54 = tpu.reciprocal %53 {approx = true} : vector<8x1xf32> -> vector<8x1xf32>
    %55 = vector.broadcast %54 : vector<8x1xf32> to vector<8x8xf32>
    %56 = arith.mulf %51, %55 : vector<8x8xf32>
    %57 = arith.truncf %56 : vector<8x8xf32> to vector<8x8xbf16>
    %58 = vector.extract_strided_slice %42 {offsets = [0, 0], sizes = [8, 16], strides = [1, 1]} : vector<8x64xbf16> to vector<8x16xbf16>
    %cst_19 = arith.constant dense<0.000000e+00> : vector<8x16xf32>
    %59 = tpu.matmul %57, %58, %cst_19 {dimension_numbers = #tpu.dot_dimension_numbers<[1], [0], [0], [1], [0, 0, 1, 1], [], []>} : vector<8x8xbf16>, vector<8x16xbf16>, vector<8x16xf32> -> vector<8x16xf32>
    %60 = vector.extract_strided_slice %38 {offsets = [0, 16], sizes = [8, 16], strides = [1, 1]} : vector<8x64xbf16> to vector<8x16xbf16>
    %61 = vector.extract_strided_slice %40 {offsets = [0, 16], sizes = [8, 16], strides = [1, 1]} : vector<8x64xbf16> to vector<8x16xbf16>
    %cst_20 = arith.constant dense<0.000000e+00> : vector<8x8xf32>
    %62 = tpu.matmul %60, %61, %cst_20 {dimension_numbers = #tpu.dot_dimension_numbers<[1], [1], [0], [0], [0, 0, 1, 0], [], []>} : vector<8x16xbf16>, vector<8x16xbf16>, vector<8x8xf32> -> vector<8x8xf32>
    %63 = arith.addf %62, %9 : vector<8x8xf32>
    %cst_21 = arith.constant dense<0xFF800000> : vector<8xf32>
    %64 = vector.multi_reduction <maximumf>, %63, %cst_21 [1] : vector<8x8xf32> to vector<8xf32>
    %65 = vector.shape_cast %64 : vector<8xf32> to vector<8x1xf32>
    %66 = vector.broadcast %65 : vector<8x1xf32> to vector<8x8xf32>
    %67 = arith.subf %63, %66 : vector<8x8xf32>
    %68 = math.exp %67 : vector<8x8xf32>
    %cst_22 = arith.constant dense<0.000000e+00> : vector<8xf32>
    %69 = vector.multi_reduction <add>, %68, %cst_22 [1] : vector<8x8xf32> to vector<8xf32>
    %70 = vector.shape_cast %69 : vector<8xf32> to vector<8x1xf32>
    %71 = tpu.reciprocal %70 {approx = true} : vector<8x1xf32> -> vector<8x1xf32>
    %72 = vector.broadcast %71 : vector<8x1xf32> to vector<8x8xf32>
    %73 = arith.mulf %68, %72 : vector<8x8xf32>
    %74 = arith.truncf %73 : vector<8x8xf32> to vector<8x8xbf16>
    %75 = vector.extract_strided_slice %42 {offsets = [0, 16], sizes = [8, 16], strides = [1, 1]} : vector<8x64xbf16> to vector<8x16xbf16>
    %cst_23 = arith.constant dense<0.000000e+00> : vector<8x16xf32>
    %76 = tpu.matmul %74, %75, %cst_23 {dimension_numbers = #tpu.dot_dimension_numbers<[1], [0], [0], [1], [0, 0, 1, 1], [], []>} : vector<8x8xbf16>, vector<8x16xbf16>, vector<8x16xf32> -> vector<8x16xf32>
    %77 = vector.extract_strided_slice %38 {offsets = [0, 32], sizes = [8, 16], strides = [1, 1]} : vector<8x64xbf16> to vector<8x16xbf16>
    %78 = vector.extract_strided_slice %40 {offsets = [0, 32], sizes = [8, 16], strides = [1, 1]} : vector<8x64xbf16> to vector<8x16xbf16>
    %cst_24 = arith.constant dense<0.000000e+00> : vector<8x8xf32>
    %79 = tpu.matmul %77, %78, %cst_24 {dimension_numbers = #tpu.dot_dimension_numbers<[1], [1], [0], [0], [0, 0, 1, 0], [], []>} : vector<8x16xbf16>, vector<8x16xbf16>, vector<8x8xf32> -> vector<8x8xf32>
    %80 = arith.addf %79, %9 : vector<8x8xf32>
    %cst_25 = arith.constant dense<0xFF800000> : vector<8xf32>
    %81 = vector.multi_reduction <maximumf>, %80, %cst_25 [1] : vector<8x8xf32> to vector<8xf32>
    %82 = vector.shape_cast %81 : vector<8xf32> to vector<8x1xf32>
    %83 = vector.broadcast %82 : vector<8x1xf32> to vector<8x8xf32>
    %84 = arith.subf %80, %83 : vector<8x8xf32>
    %85 = math.exp %84 : vector<8x8xf32>
    %cst_26 = arith.constant dense<0.000000e+00> : vector<8xf32>
    %86 = vector.multi_reduction <add>, %85, %cst_26 [1] : vector<8x8xf32> to vector<8xf32>
    %87 = vector.shape_cast %86 : vector<8xf32> to vector<8x1xf32>
    %88 = tpu.reciprocal %87 {approx = true} : vector<8x1xf32> -> vector<8x1xf32>
    %89 = vector.broadcast %88 : vector<8x1xf32> to vector<8x8xf32>
    %90 = arith.mulf %85, %89 : vector<8x8xf32>
    %91 = arith.truncf %90 : vector<8x8xf32> to vector<8x8xbf16>
    %92 = vector.extract_strided_slice %42 {offsets = [0, 32], sizes = [8, 16], strides = [1, 1]} : vector<8x64xbf16> to vector<8x16xbf16>
    %cst_27 = arith.constant dense<0.000000e+00> : vector<8x16xf32>
    %93 = tpu.matmul %91, %92, %cst_27 {dimension_numbers = #tpu.dot_dimension_numbers<[1], [0], [0], [1], [0, 0, 1, 1], [], []>} : vector<8x8xbf16>, vector<8x16xbf16>, vector<8x16xf32> -> vector<8x16xf32>
    %94 = vector.extract_strided_slice %38 {offsets = [0, 48], sizes = [8, 16], strides = [1, 1]} : vector<8x64xbf16> to vector<8x16xbf16>
    %95 = vector.extract_strided_slice %40 {offsets = [0, 48], sizes = [8, 16], strides = [1, 1]} : vector<8x64xbf16> to vector<8x16xbf16>
    %cst_28 = arith.constant dense<0.000000e+00> : vector<8x8xf32>
    %96 = tpu.matmul %94, %95, %cst_28 {dimension_numbers = #tpu.dot_dimension_numbers<[1], [1], [0], [0], [0, 0, 1, 0], [], []>} : vector<8x16xbf16>, vector<8x16xbf16>, vector<8x8xf32> -> vector<8x8xf32>
    %97 = arith.addf %96, %9 : vector<8x8xf32>
    %cst_29 = arith.constant dense<0xFF800000> : vector<8xf32>
    %98 = vector.multi_reduction <maximumf>, %97, %cst_29 [1] : vector<8x8xf32> to vector<8xf32>
    %99 = vector.shape_cast %98 : vector<8xf32> to vector<8x1xf32>
    %100 = vector.broadcast %99 : vector<8x1xf32> to vector<8x8xf32>
    %101 = arith.subf %97, %100 : vector<8x8xf32>
    %102 = math.exp %101 : vector<8x8xf32>
    %cst_30 = arith.constant dense<0.000000e+00> : vector<8xf32>
    %103 = vector.multi_reduction <add>, %102, %cst_30 [1] : vector<8x8xf32> to vector<8xf32>
    %104 = vector.shape_cast %103 : vector<8xf32> to vector<8x1xf32>
    %105 = tpu.reciprocal %104 {approx = true} : vector<8x1xf32> -> vector<8x1xf32>
    %106 = vector.broadcast %105 : vector<8x1xf32> to vector<8x8xf32>
    %107 = arith.mulf %102, %106 : vector<8x8xf32>
    %108 = arith.truncf %107 : vector<8x8xf32> to vector<8x8xbf16>
    %109 = vector.extract_strided_slice %42 {offsets = [0, 48], sizes = [8, 16], strides = [1, 1]} : vector<8x64xbf16> to vector<8x16xbf16>
    %cst_31 = arith.constant dense<0.000000e+00> : vector<8x16xf32>
    %110 = tpu.matmul %108, %109, %cst_31 {dimension_numbers = #tpu.dot_dimension_numbers<[1], [0], [0], [1], [0, 0, 1, 1], [], []>} : vector<8x8xbf16>, vector<8x16xbf16>, vector<8x16xf32> -> vector<8x16xf32>
    %111 = tpu.concatenate %59, %76, %93, %110 in 1 : vector<8x16xf32>, vector<8x16xf32>, vector<8x16xf32>, vector<8x16xf32> -> vector<8x64xf32>
    %112 = arith.truncf %111 : vector<8x64xf32> to vector<8x64xbf16>
    %c0_32 = arith.constant 0 : index
    %c0_33 = arith.constant 0 : index
    %113 = vector.load %arg5[%c0_32, %c0_33] : memref<64x64xbf16, #tpu.memory_space<vmem>>, vector<64x64xbf16>
    %cst_34 = arith.constant dense<0.000000e+00> : vector<8x64xf32>
    %114 = tpu.matmul %112, %113, %cst_34 {dimension_numbers = #tpu.dot_dimension_numbers<[1], [0], [0], [1], [0, 0, 1, 1], [], []>} : vector<8x64xbf16>, vector<64x64xbf16>, vector<8x64xf32> -> vector<8x64xf32>
    %115 = arith.addf %1, %114 : vector<8x64xf32>
    %c0_35 = arith.constant 0 : index
    %c0_36 = arith.constant 0 : index
    %116 = vector.load %arg6[%c0_35, %c0_36] : memref<1x64xf32, #tpu.memory_space<vmem>>, vector<1x64xf32>
    %117 = vector.broadcast %116 : vector<1x64xf32> to vector<8x64xf32>
    %118 = arith.addf %115, %117 : vector<8x64xf32>
    %cst_37 = arith.constant dense<0.000000e+00> : vector<8xf32>
    %119 = vector.multi_reduction <add>, %118, %cst_37 [1] : vector<8x64xf32> to vector<8xf32>
    %120 = vector.shape_cast %119 : vector<8xf32> to vector<8x1xf32>
    %cst_38 = arith.constant 6.400000e+01 : f32
    %121 = vector.broadcast %cst_38 : f32 to vector<8x1xf32>
    %122 = arith.divf %120, %121 : vector<8x1xf32>
    %123 = vector.broadcast %122 : vector<8x1xf32> to vector<8x64xf32>
    %124 = arith.subf %118, %123 : vector<8x64xf32>
    %125 = arith.mulf %124, %124 : vector<8x64xf32>
    %cst_39 = arith.constant dense<0.000000e+00> : vector<8xf32>
    %126 = vector.multi_reduction <add>, %125, %cst_39 [1] : vector<8x64xf32> to vector<8xf32>
    %127 = vector.shape_cast %126 : vector<8xf32> to vector<8x1xf32>
    %cst_40 = arith.constant 6.400000e+01 : f32
    %128 = vector.broadcast %cst_40 : f32 to vector<8x1xf32>
    %129 = arith.divf %127, %128 : vector<8x1xf32>
    %130 = vector.broadcast %122 : vector<8x1xf32> to vector<8x64xf32>
    %131 = arith.subf %118, %130 : vector<8x64xf32>
    %cst_41 = arith.constant 9.99999974E-6 : f32
    %132 = vector.broadcast %cst_41 : f32 to vector<8x1xf32>
    %133 = arith.addf %129, %132 : vector<8x1xf32>
    %134 = math.rsqrt %133 : vector<8x1xf32>
    %135 = vector.broadcast %134 : vector<8x1xf32> to vector<8x64xf32>
    %136 = arith.mulf %131, %135 : vector<8x64xf32>
    %137 = vector.broadcast %2 : vector<1x64xf32> to vector<8x64xf32>
    %138 = arith.mulf %136, %137 : vector<8x64xf32>
    %139 = vector.broadcast %3 : vector<1x64xf32> to vector<8x64xf32>
    %140 = arith.addf %138, %139 : vector<8x64xf32>
    %141 = arith.truncf %140 : vector<8x64xf32> to vector<8x64xbf16>
    %c0_42 = arith.constant 0 : index
    %c0_43 = arith.constant 0 : index
    %142 = vector.load %arg7[%c0_42, %c0_43] : memref<64x256xbf16, #tpu.memory_space<vmem>>, vector<64x256xbf16>
    %cst_44 = arith.constant dense<0.000000e+00> : vector<8x256xf32>
    %143 = tpu.matmul %141, %142, %cst_44 {dimension_numbers = #tpu.dot_dimension_numbers<[1], [0], [0], [1], [0, 0, 1, 1], [], []>} : vector<8x64xbf16>, vector<64x256xbf16>, vector<8x256xf32> -> vector<8x256xf32>
    %c0_45 = arith.constant 0 : index
    %c0_46 = arith.constant 0 : index
    %144 = vector.load %arg8[%c0_45, %c0_46] : memref<1x256xf32, #tpu.memory_space<vmem>>, vector<1x256xf32>
    %145 = vector.broadcast %144 : vector<1x256xf32> to vector<8x256xf32>
    %146 = arith.addf %143, %145 : vector<8x256xf32>
    %cst_47 = arith.constant 0.000000e+00 : f32
    %147 = vector.broadcast %cst_47 : f32 to vector<8x256xf32>
    %148 = arith.maximumf %146, %147 : vector<8x256xf32>
    %149 = arith.truncf %148 : vector<8x256xf32> to vector<8x256xbf16>
    %c0_48 = arith.constant 0 : index
    %c0_49 = arith.constant 0 : index
    %150 = vector.load %arg9[%c0_48, %c0_49] : memref<256x64xbf16, #tpu.memory_space<vmem>>, vector<256x64xbf16>
    %cst_50 = arith.constant dense<0.000000e+00> : vector<8x64xf32>
    %151 = tpu.matmul %149, %150, %cst_50 {dimension_numbers = #tpu.dot_dimension_numbers<[1], [0], [0], [1], [0, 0, 1, 1], [], []>} : vector<8x256xbf16>, vector<256x64xbf16>, vector<8x64xf32> -> vector<8x64xf32>
    %152 = arith.addf %118, %151 : vector<8x64xf32>
    %c0_51 = arith.constant 0 : index
    %c0_52 = arith.constant 0 : index
    %153 = vector.load %arg10[%c0_51, %c0_52] : memref<1x64xf32, #tpu.memory_space<vmem>>, vector<1x64xf32>
    %154 = vector.broadcast %153 : vector<1x64xf32> to vector<8x64xf32>
    %155 = arith.addf %152, %154 : vector<8x64xf32>
    %c0_53 = arith.constant 0 : index
    %c0_54 = arith.constant 0 : index
    %c0_55 = arith.constant 0 : index
    %156 = vector.load %arg11[%c0_53, %c0_54, %c0_55] : memref<1x8x64xf32, #tpu.memory_space<vmem>>, vector<1x8x64xf32>
    %157 = vector.shape_cast %156 : vector<1x8x64xf32> to vector<8x64xf32>
    %158 = vector.shape_cast %155 : vector<8x64xf32> to vector<1x8x64xf32>
    tpu.vector_store %arg11[%c0_53, %c0_54, %c0_55], %158 {strides = array<i32>} : memref<1x8x64xf32, #tpu.memory_space<vmem>>, vector<1x8x64xf32>,
    return
  }
  func.func @transform_0(%arg0: i32) -> (i32, i32, i32) {
    %c0_i32 = arith.constant 0 : i32
    %c0_i32_0 = arith.constant 0 : i32
    %c0_i32_1 = arith.constant 0 : i32
    return %arg0, %c0_i32, %c0_i32_0 : i32, i32, i32
  }
  func.func @transform_1(%arg0: i32) -> (i32, i32) {
    %c0_i32 = arith.constant 0 : i32
    %c0_i32_0 = arith.constant 0 : i32
    %c0_i32_1 = arith.constant 0 : i32
    return %c0_i32, %c0_i32_0 : i32, i32
  }
  func.func @transform_2(%arg0: i32) -> (i32, i32) {
    %c0_i32 = arith.constant 0 : i32
    %c0_i32_0 = arith.constant 0 : i32
    %c0_i32_1 = arith.constant 0 : i32
    return %c0_i32, %c0_i32_0 : i32, i32
  }
  func.func @transform_3(%arg0: i32) -> (i32, i32) {
    %c0_i32 = arith.constant 0 : i32
    %c0_i32_0 = arith.constant 0 : i32
    %c0_i32_1 = arith.constant 0 : i32
    return %c0_i32, %c0_i32_0 : i32, i32
  }
  func.func @transform_4(%arg0: i32) -> (i32, i32) {
    %c0_i32 = arith.constant 0 : i32
    %c0_i32_0 = arith.constant 0 : i32
    %c0_i32_1 = arith.constant 0 : i32
    return %c0_i32, %c0_i32_0 : i32, i32
  }
  func.func @transform_5(%arg0: i32) -> (i32, i32) {
    %c0_i32 = arith.constant 0 : i32
    %c0_i32_0 = arith.constant 0 : i32
    %c0_i32_1 = arith.constant 0 : i32
    return %c0_i32, %c0_i32_0 : i32, i32
  }
  func.func @transform_6(%arg0: i32) -> (i32, i32) {
    %c0_i32 = arith.constant 0 : i32
    %c0_i32_0 = arith.constant 0 : i32
    %c0_i32_1 = arith.constant 0 : i32
    return %c0_i32, %c0_i32_0 : i32, i32
  }
  func.func @transform_7(%arg0: i32) -> (i32, i32) {
    %c0_i32 = arith.constant 0 : i32
    %c0_i32_0 = arith.constant 0 : i32
    %c0_i32_1 = arith.constant 0 : i32
    return %c0_i32, %c0_i32_0 : i32, i32
  }
  func.func @transform_8(%arg0: i32) -> (i32, i32) {
    %c0_i32 = arith.constant 0 : i32
    %c0_i32_0 = arith.constant 0 : i32
    %c0_i32_1 = arith.constant 0 : i32
    return %c0_i32, %c0_i32_0 : i32, i32
  }
  func.func @transform_9(%arg0: i32) -> (i32, i32) {
    %c0_i32 = arith.constant 0 : i32
    %c0_i32_0 = arith.constant 0 : i32
    %c0_i32_1 = arith.constant 0 : i32
    return %c0_i32, %c0_i32_0 : i32, i32
  }
  func.func @transform_10(%arg0: i32) -> (i32, i32, i32) {
    %c0_i32 = arith.constant 0 : i32
    %c0_i32_0 = arith.constant 0 : i32
    %c0_i32_1 = arith.constant 0 : i32
    return %arg0, %c0_i32, %c0_i32_0 : i32, i32, i32
  }
}

</mosaic_0001>

<bundles_post_ra>
// kernel: tpu_custom_call.1
= control target key start
LH: loop header
LB: loop body
LE: loop exit
PB: predicated region body
PF: predicated region fallthrough
CT: control target
= control target key end

     0   :  { %15 = vsyncpa [#allocation3], 0  ;;  %s2148_s0 = inlined_call_operand.vmem [shape: f32[2,8,64], index: 0, kind: input, shape index: {}]   ;;  %s2149_s1 = inlined_call_operand.vmem [shape: f32[1,64], index: 1, kind: input, shape index: {}]   ;;  %s2150_s2 = inlined_call_operand.vmem [shape: f32[1,64], index: 2, kind: input, shape index: {}]   ;;  %s2151_s3 = inlined_call_operand.vmem [shape: bf16[64,192], index: 3, kind: input, shape index: {}]   ;;  %s2152_s4 = inlined_call_operand.vmem [shape: bf16[64,64], index: 4, kind: input, shape index: {}]   ;;  %s2153_s5 = inlined_call_operand.vmem [shape: f32[1,64], index: 5, kind: input, shape index: {}]   ;;  %s2154_s6 = inlined_call_operand.vmem [shape: bf16[64,256], index: 6, kind: input, shape index: {}]   ;;  %s2155_s7 = inlined_call_operand.vmem [shape: f32[1,256], index: 7, kind: input, shape index: {}]   ;;  %s2156_s8 = inlined_call_operand.vmem [shape: bf16[256,64], index: 8, kind: input, shape index: {}]   ;;  %s2157_s9 = inlined_call_operand.vmem [shape: f32[1,64], index: 9, kind: input, shape index: {}]   ;;  %s2158_s10 = inlined_call_operand.hbm [shape: f32[2,8,64], index: 10, kind: output, shape index: {}]  }
   0x1   :  { %17 = vsyncpa [#allocation3 + $0x1], 0  ;;  %s1819_s13 = smov 0   ;;  %s1821_s14 = smov 0  }
   0x2   :  { %s1823_s15 = smov 0   ;;  %s1825_s16 = smov 0  }
   0x3 LB: > { %s1840_s17 = sadd.s32 4294967295, %s1750_s16   ;;  %s1410_s18 = sadd.s32 4294967294, %s1750_s16   ;;  %s1750_s16 = sphi %s1825_s16, %s2164_s16   ;;  %s1746_s15 = sphi %s1823_s15, %s2163_s15   ;;  %s1742_s14 = sphi %s1821_s14, %s2162_s14   ;;  %s1738_s13 = sphi %s1819_s13, %s2161_s13  }
   0x4   : > { %s1844_s19 = sadd.s32 1, %s1750_s16   ;;  %s245_s20 = sadd.s32 1, %s1746_s15 }
   0x5   : > { %s242_s21 = ssub.s32 %s1750_s16, %s1844_s19  ;;  %p255_p0 = scmp.ne.s32.totalorder %s1746_s15, %s1742_s14 }
   0x6   : > { %p243_p1 = scmp.eq.s32.totalorder %s242_s21, 0  ;;  %p256_p2 = scmp.eq.s32.totalorder %s1840_s17, 1 }
   0x7   : > { %p261_p3 = scmp.ne.s32.totalorder %s1742_s14, %s1738_s13  ;;  %p262_p4 = scmp.eq.s32.totalorder %s1410_s18, 1 }
   0x8   : > { %s1855_s22 = scalar_select %p243_p1, %s1746_s15, %s245_s20  }
   0x9   : > { %p1857_p5 = por %p256_p2, %p255_p0  ;;  %p1861_p6 = por %p262_p4, %p261_p3 }
   0xa   : > { %p1413_p7 = scmp.ge.s32.totalorder %s1750_s16, 1  ;;  %p314_p8 = scmp.lt.s32.totalorder %s1750_s16, 3 }
   0xc   : > { %p315_p9 = pnand %p1413_p7, %p314_p8 }
   0xd   : > { %p351_p10 = scmp.lt.s32.totalorder (!%p315_p9), %s1840_s17, 1  ;;  %vm365_vm0 = vcmask (!%p315_p9), 523264   ;;  %v1624_v7 = vld [vmem:[%s2151_s3 + $0x4] ss:$8 sps:$4 sm:$0xff] (!%p315_p9)   ;;  %v1626_v8 = vld [vmem:[%s2151_s3] ss:$8 sps:$4 sm:$0xff] (!%p315_p9)   ;;  %v359_v47 = vlaneseq (!%p315_p9) }
   0xe   : > { %318 = sbr.rel (%p315_p9) target bundleno = 2583 (0xa17), region = 60  ;;  %v1627_v9 = vld [vmem:[%s2151_s3 + $0x14] ss:$8 sps:$4 sm:$0xff] (!%p315_p9)   ;;  %446 = vmatprep.subr.bf16.mxu1 (!%p315_p9), %v1624_v7  ;;  %v1629_v10 = vld [vmem:[%s2151_s3 + $0x10] ss:$8 sps:$4 sm:$0xff] (!%p315_p9)   ;;  %v1752_v11 = vmov (!%p315_p9), 0  }
   0xf   : > { %447 = vmatpush1.bf16.msra.mxu1 (!%p315_p9), %v1626_v8  ;;  %478 = vmatprep.mubr.bf16.mxu1 (!%p315_p9), %v1752_v11  ;;  %v1630_v12 = vld [vmem:[%s2151_s3 + $0x24] ss:$8 sps:$4 sm:$0xff] (!%p315_p9)   ;;  %v1632_v13 = vld [vmem:[%s2151_s3 + $0x20] ss:$8 sps:$4 sm:$0xff] (!%p315_p9)   ;;  %v1633_v14 = vld [vmem:[%s2151_s3 + $0x34] ss:$8 sps:$4 sm:$0xff] (!%p315_p9)  }
  0x10   : > { %448 = vmatprep.subr.bf16.mxu1 (!%p315_p9), %v1627_v9  ;;  %v1635_v15 = vld [vmem:[%s2151_s3 + $0x30] ss:$8 sps:$4 sm:$0xff] (!%p315_p9)   ;;  %v1906_v20 = vld [vmem:[%s2149_s1] ss:$0 sm:$0xff] (!%p315_p9)  ;;  %v1753_v26 = vmov (!%p315_p9), 0.0   ;;  %vm1754_vm1 = vmmov (!%p315_p9), 0  }
  0x11   : > { %v1911_v22 = vld [vmem:[%s2150_s2] ss:$0 sm:$0xff] (!%p315_p9)  ;;  %1526 = vmatprep.subr.bf16.mxu0 (!%p315_p9), %v1753_v26  ;;  %1528 = vmatprep.mubr.msk.bf16.mxu0 (!%p315_p9), %vm1754_vm1, %v1753_v26  ;;  %s1755_s28 = smov (!%p315_p9), 64   ;;  %s1757_s30 = smov (!%p315_p9), 48   ;;  %vm494_vm2 = vcmask (!%p315_p9), 130048   ;;  %vm557_vm3 = vcmask (!%p315_p9), 1043456  }
  0x12   : > { %s1758_s11 = smov (!%p315_p9), 32   ;;  %s1759_s12 = smov (!%p315_p9), 96   ;;  %v1953_v48 = vshrl.u32 (!%p315_p9), %v359_v47, 7  ;;  %v362_v49 = vand.u32 (!%p315_p9), 127, %v359_v47  ;;  %v1762_v50 = vmov (!%p315_p9), -1e+30  }
  0x13   : > { %449 = vmatpush1.bf16.msra.mxu1 (!%p315_p9), %v1629_v10  ;;  %s1760_s18 = smov (!%p315_p9), 16   ;;  %s1761_s20 = smov (!%p315_p9), 80   ;;  %vm541_vm5 = vcmask (!%p315_p9), 64512   ;;  %vm946_vm6 = vcmask (!%p315_p9), 261120   ;;  %vm948_vm7 = vcmask (!%p315_p9), 392192  }
  0x14   : > { %450 = vmatprep.subr.bf16.mxu1 (!%p315_p9), %v1630_v12  ;;  %vm363_vm4 = vcmp.le.s32.totalorder (!%p315_p9), %v362_v49, %v1953_v48 }
  0x15   : > { %s352_s25 = scalar_select %p351_p10, %s1840_s17, 1  ;;  %v364_v51 = vsel %vm363_vm4, 0.0, %v1762_v50 }
  0x17   : > { %s1415_s26 = sshll.u32 %s352_s25, 3  ;;  %451 = vmatpush1.bf16.msra.mxu1 %v1632_v13 }
  0x18   : > { %s354_s29 = scalar_lea.vmem %s2148_s0, %s1415_s26  ;;  %452 = vmatprep.subr.bf16.mxu1 %v1633_v14 }
  0x19   : > { %v1872_v0 = vld [vmem:[%s354_s29] sm:$0xff]  ;;  %s1756_s29 = smov 112  }
  0x1a   : > { %v366_v1 = vsel %vm365_vm0, %v1872_v0, 0.0 }
  0x1b   : > { %367 = vadd.xlane.f32.xlu0 %v366_v1  ;;  %453 = vmatpush1.bf16.msra.mxu1 %v1635_v15 }
  0x1c   : > { %1514 = vmatprep.subr.bf16.mxu1 %v1753_v26 }
  0xa8   : > { %v368_v2 = vpop.xlane.xlu0 %367 }
  0xa9   : > { %v370_v3 = vmul.f32 0.015625, %v368_v2 }
  0xab   : > { %v371_v4 = vsub.f32 %v1872_v0, %v370_v3 }
  0xad   : > { %v372_v5 = vmul.f32 %v371_v4, %v371_v4 }
  0xaf   : > { %v373_v6 = vsel %vm365_vm0, %v372_v5, 0.0 }
  0xb0   : > { %374 = vadd.xlane.f32.xlu0 %v373_v6 }
 0x13d   : > { %v375_v16 = vpop.xlane.xlu0 %374 }
 0x13e   : > { %v376_v17 = vmul.f32 0.015625, %v375_v16 }
 0x140   : > { %v377_v18 = vadd.f32 1e-05, %v376_v17 }
 0x142   : > { %1668 = vrsqrt.f32 %v377_v18 }
 0x14c   : > { %v1669_v19 = vpop.eup %1668 }
 0x14d   : > { %v379_v21 = vmul.f32 %v1669_v19, %v371_v4 }
 0x14f   : > { %v386_v23 = vmul.f32 %v1906_v20, %v379_v21 }
 0x151   : > { %v393_v24 = vadd.f32 %v1911_v22, %v386_v23 }
 0x153   : > { %v394_v25 = vpack.c.bf16 %v393_v24, %v393_v24 }
 0x155   : > { %1426 = vmatmul.mubr.msk.bf16.vlgmr.msra.gmra.mrb[0].mxu1 %vm365_vm0, %v394_v25 }
 0x156   : > { %1516 = vmatprep.mubr.msk.bf16.mxu1 %vm1754_vm1, %v1753_v26 }
 0x228   : > { %v480_v27 = vpop.f32.mrb[0].mxu1 }
 0x229   : > { %v487_v28 = vmul.f32 0.125, %v480_v27  ;;  %v489_v29 = vpack.c.bf16 %v480_v27, %v480_v27  ;;  %v482_v30 = vpop.f32.mrb[1].mxu1 }
 0x22a   : > { %v484_v31 = vpop.f32.mrb[2].mxu1  ;;  %v1930_v37 = vpack.c.bf16 %v482_v30, %v482_v30 }
 0x22b   : > { %v488_v32 = vpack.c.bf16 %v487_v28, %v487_v28  ;;  %492 = vrot.lane.b32.xlu1 %v489_v29, %s1755_s28  ;;  %v485_v33 = vpop.f32.mrb[3].mxu1 }
 0x22c   : > { %v559_v40 = vsel %vm557_vm3, %v1930_v37, 0 }
 0x22d   : > { %602 = vrot.lane.b32.xlu0 %v488_v32, %s1756_s29 }
 0x22f   : > { %604 = vrot.lane.b32.xlu1 %v489_v29, %s1757_s30 }
 0x233   : > { %715 = vrot.lane.b32.xlu1 %v489_v29, %s1758_s11 }
 0x237   : > { %713 = vrot.lane.b32.xlu1 %v488_v32, %s1759_s12 }
 0x23b   : > { %825 = vrot.lane.b32.xlu1 %v489_v29, %s1760_s18 }
 0x23f   : > { %823 = vrot.lane.b32.xlu1 %v488_v32, %s1761_s20 }
 0x29d   : > { %v493_v34 = vpop.permute.xlu1 %492 }
 0x29e   : > { %v499_v35 = vsel %vm494_vm2, %v493_v34, 0 }
 0x29f   : > { %1515 = vmatpush3.bf16.xpose.msra.mxu1 %v499_v35  ;;  %v603_v41 = vpop.permute.xlu0 %602 }
 0x2a0   : > { %1520 = vmatprep.subr.bf16.mxu1 %v1753_v26 }
 0x2a1   : > { %v605_v36 = vpop.permute.xlu1 %604 }
 0x2a2   : > { %v610_v38 = vsel %vm494_vm2, %v605_v36, 0 }
 0x2a3   : > { %1527 = vmatpush3.bf16.xpose.msra.mxu0 %v610_v38 }
 0x2a4   : > { %1538 = vmatprep.subr.bf16.mxu0 %v1753_v26 }
 0x2a5   : > { %v716_v39 = vpop.permute.xlu1 %715 }
 0x2a6   : > { %1517 = vmatmul.mubr.msk.bf16.vlgmr.msra.gmra.mrb[4].mxu1 %vm494_vm2, %v488_v32  ;;  %v721_v43 = vsel %vm494_vm2, %v716_v39, 0 }
 0x2a7   : > { %1521 = vmatpush3.bf16.msra.mxu1 %v559_v40  ;;  %1522 = vmatprep.mubr.msk.bf16.mxu1 %vm1754_vm1, %v1753_v26 }
 0x2a8   : > { %1532 = vmatprep.subr.bf16.mxu1 %v1753_v26 }
 0x2a9   : > { %v714_v42 = vpop.permute.xlu1 %713 }
 0x2aa   : > { %1529 = vmatmul.mubr.msk.bf16.vlgmr.msra.gmra.mrb[0].mxu0 %vm494_vm2, %v603_v41 }
 0x2ab   : > { %1539 = vmatpush3.bf16.xpose.msra.mxu0 %v721_v43  ;;  %1540 = vmatprep.mubr.msk.bf16.mxu0 %vm1754_vm1, %v1753_v26 }
 0x2ac   : > { %1550 = vmatprep.subr.bf16.mxu0 %v1753_v26 }
 0x2ad   : > { %v826_v44 = vpop.permute.xlu1 %825 }
 0x2ae   : > { %v831_v45 = vsel %vm494_vm2, %v826_v44, 0 }
 0x2b1   : > { %v824_v46 = vpop.permute.xlu1 %823 }
 0x2b2   : > { %1541 = vmatmul.mubr.msk.bf16.vlgmr.msra.gmra.mrb[4].mxu0 %vm494_vm2, %v714_v42 }
 0x2b3   : > { %1551 = vmatpush3.bf16.xpose.msra.mxu0 %v831_v45  ;;  %1552 = vmatprep.mubr.msk.bf16.mxu0 %vm1754_vm1, %v1753_v26 }
 0x2b4   : > { %1562 = vmatprep.subr.bf16.mxu0 %v1753_v26 }
 0x2ba   : > { %1553 = vmatmul.mubr.msk.bf16.vlgmr.msra.gmra.mrb[8].mxu0 %vm494_vm2, %v824_v46 }
 0x2bb   : > { %1570 = vmatprep.mubr.msk.bf16.mxu0 %vm1754_vm1, %v1753_v26 }
 0x379   : > { %v535_v52 = vpop.f32.mrb[4].mxu1 }
 0x37a   : > { %v536_v53 = vadd.f32 %v535_v52, %v364_v51  ;;  %v1518_v54 = vpop.f32.mrb[5].mxu1 }
 0x37b   : > { %v538_v55 = vpop.f32.mrb[6].mxu1 }
 0x37c   : > { %v1519_v56 = vpop.f32.mrb[7].mxu1  ;;  %v542_v57 = vsel %vm541_vm5, %v536_v53, -inf }
 0x37d   : > { %v646_v58 = vpop.f32.mrb[0].mxu0  ;;  %543 = vmax.xlane.f32.xlu1 %v542_v57 }
 0x37e   : > { %v647_v59 = vadd.f32 %v646_v58, %v364_v51  ;;  %v1530_v60 = vpop.f32.mrb[1].mxu0 }
 0x37f   : > { %v649_v61 = vpop.f32.mrb[2].mxu0  ;;  %v1636_v60 = vld [vmem:[%s2152_s4] sm:$0xff]  }
 0x380   : > { %v1531_v62 = vpop.f32.mrb[3].mxu0  ;;  %v652_v63 = vsel %vm541_vm5, %v647_v59, -inf  ;;  %1563 = vmatpush3.bf16.msra.mxu0 %v1636_v60 }
 0x381   : > { %653 = vmax.xlane.f32.xlu0 %v652_v63  ;;  %1564 = vmatprep.subr.bf16.mxu0 %v1753_v26 }
 0x385   : > { %v757_v1 = vpop.f32.mrb[4].mxu0 }
 0x386   : > { %v758_v2 = vadd.f32 %v757_v1, %v364_v51  ;;  %v1542_v3 = vpop.f32.mrb[5].mxu0 }
 0x387   : > { %v760_v4 = vpop.f32.mrb[6].mxu0 }
 0x388   : > { %v1543_v5 = vpop.f32.mrb[7].mxu0  ;;  %v763_v6 = vsel %vm541_vm5, %v758_v2, -inf }
 0x389   : > { %764 = vmax.xlane.f32.xlu1 %v763_v6  ;;  %v1638_v6 = vld [vmem:[%s2152_s4 + $0x10] sm:$0xff]  }
 0x38d   : > { %v867_v7 = vpop.f32.mrb[8].mxu0 }
 0x38e   : > { %v868_v8 = vadd.f32 %v867_v7, %v364_v51  ;;  %v1554_v9 = vpop.f32.mrb[9].mxu0  ;;  %v1639_v7 = vld [vmem:[%s2152_s4 + $0x18] sm:$0xff]  }
 0x38f   : > { %v870_v10 = vpop.f32.mrb[10].mxu0 }
 0x390   : > { %v1555_v12 = vpop.f32.mrb[11].mxu0  ;;  %v873_v13 = vsel %vm541_vm5, %v868_v8, -inf }
 0x391   : > { %874 = vmax.xlane.f32.xlu0 %v873_v13 }
 0x40a   : > { %v544_v14 = vpop.xlane.xlu1 %543 }
 0x40b   : > { %v545_v15 = vsub.f32 %v536_v53, %v544_v14 }
 0x40d   : > { %v546_v16 = vmul.f32 1.442695, %v545_v15 }
 0x40e   : > { %v654_v17 = vpop.xlane.xlu0 %653 }
 0x40f   : > { %1670 = vpow2.f32 %v546_v16  ;;  %v655_v18 = vsub.f32 %v647_v59, %v654_v17 }
 0x411   : > { %v656_v19 = vmul.f32 1.442695, %v655_v18 }
 0x413   : > { %1672 = vpow2.f32 %v656_v19 }
 0x416   : > { %v765_v32 = vpop.xlane.xlu1 %764 }
 0x417   : > { %v766_v33 = vsub.f32 %v758_v2, %v765_v32 }
 0x419   : > { %v1671_v21 = vpop.eup %1670  ;;  %v767_v34 = vmul.f32 1.442695, %v766_v33 }
 0x41a   : > { %v548_v23 = vsel %vm541_vm5, %v1671_v21, 0.0 }
 0x41b   : > { %549 = vadd.xlane.f32.xlu1 %v548_v23 }
 0x41d   : > { %v1673_v24 = vpop.eup %1672 }
 0x41e   : > { %v875_v25 = vpop.xlane.xlu0 %874  ;;  %v658_v27 = vsel %vm541_vm5, %v1673_v24, 0.0 }
 0x41f   : > { %v876_v28 = vsub.f32 %v868_v8, %v875_v25  ;;  %659 = vadd.xlane.f32.xlu0 %v658_v27  ;;  %v1440_v27 = vld [vmem:[%s2153_s5] ss:$0 sm:$0xff] }
 0x421   : > { %v877_v29 = vmul.f32 1.442695, %v876_v28 }
 0x423   : > { %1674 = vpow2.f32 %v877_v29 }
 0x424   : > { %1676 = vpow2.f32 %v767_v34 }
 0x42c   : > { %665 = vrot.lane.b32.xlu1 %v1930_v37, %s1756_s29  ;;  %s348_s29 = sand.u32 1, %s1742_s14  }
 0x42d   : > { %v1675_v30 = vpop.eup %1674  ;;  %s1338_s28 = scalar_lea.sflag [#allocation3], %s348_s29 }
 0x42e   : > { %v879_v31 = vsel %vm541_vm5, %v1675_v30, 0.0  ;;  %v1677_v35 = vpop.eup %1676 }
 0x42f   : > { %880 = vadd.xlane.f32.xlu0 %v879_v31  ;;  %v769_v36 = vsel %vm541_vm5, %v1677_v35, 0.0 }
 0x445   : > { %775 = vrot.lane.b32.xlu0 %v1930_v37, %s1759_s12  ;;  %s1414_s12 = sshll.u32 %s348_s29, 3 }
 0x450   : > { %770 = vadd.xlane.f32.xlu1 %v769_v36 }
 0x461   : > { %885 = vrot.lane.b32.xlu1 %v1930_v37, %s1761_s20 }
 0x4a8   : > { %v550_v38 = vpop.xlane.xlu1 %549 }
 0x4a9   : > { %1678 = vrcp.f32 %v550_v38 }
 0x4ac   : > { %v660_v39 = vpop.xlane.xlu0 %659  ;;  %v666_v42 = vpop.permute.xlu1 %665 }
 0x4ad   : > { %1680 = vrcp.f32 %v660_v39  ;;  %v671_v45 = vsel %vm557_vm3, %v666_v42, 0  ;;  %v1643_v42 = vld [vmem:[%s2154_s6 + $0x10] ss:$8 sps:$4 sm:$0xff]  }
 0x4b3   : > { %v1679_v40 = vpop.eup %1678 }
 0x4b4   : > { %v552_v41 = vmul.f32 %v1679_v40, %v1671_v21  ;;  %v1640_v40 = vld [vmem:[%s2154_s6] ss:$8 sps:$4 sm:$0xff]  }
 0x4b6   : > { %v553_v43 = vpack.c.bf16 %v552_v41, %v552_v41  ;;  %v1645_v41 = vld [vmem:[%s2154_s6 + $0x14] ss:$8 sps:$4 sm:$0xff]  }
 0x4b7   : > { %v1681_v44 = vpop.eup %1680 }
 0x4b8   : > { %1523 = vmatmul.mubr.msk.bf16.vlgmr.msra.gmra.mrb[8].mxu1 %vm541_vm5, %v553_v43  ;;  %v662_v46 = vmul.f32 %v1681_v44, %v1673_v24  ;;  %v1648_v43 = vld [vmem:[%s2154_s6 + $0x24] ss:$8 sps:$4 sm:$0xff]   ;;  %v1646_v44 = vld [vmem:[%s2154_s6 + $0x20] ss:$8 sps:$4 sm:$0xff]  }
 0x4b9   : > { %1533 = vmatpush3.bf16.msra.mxu1 %v671_v45  ;;  %1534 = vmatprep.mubr.msk.bf16.mxu1 %vm1754_vm1, %v1753_v26  ;;  %v1649_v45 = vld [vmem:[%s2154_s6 + $0x30] ss:$8 sps:$4 sm:$0xff]  }
 0x4ba   : > { %1544 = vmatprep.subr.bf16.mxu1 %v1753_v26  ;;  %v663_v47 = vpack.c.bf16 %v662_v46, %v662_v46  ;;  %v1651_v46 = vld [vmem:[%s2154_s6 + $0x34] ss:$8 sps:$4 sm:$0xff]  }
 0x4bc   : > { %v881_v37 = vpop.xlane.xlu0 %880 }
 0x4c0   : > { %v776_v49 = vpop.permute.xlu0 %775  ;;  %1535 = vmatmul.mubr.msk.bf16.vlgmr.msra.gmra.mrb[12].mxu1 %vm541_vm5, %v663_v47  ;;  %v1653_v47 = vld [vmem:[%s2156_s8] sm:$0xff]  }
 0x4c1   : > { %v781_v50 = vsel %vm557_vm3, %v776_v49, 0  ;;  %1546 = vmatprep.mubr.msk.bf16.mxu1 %vm1754_vm1, %v1753_v26  ;;  %v1654_v49 = vld [vmem:[%s2156_s8 + $0x48] sm:$0xff]  }
 0x4c2   : > { %1545 = vmatpush3.bf16.msra.mxu1 %v781_v50  ;;  %v1655_v50 = vld [vmem:[%s2156_s8 + $0x8] sm:$0xff]  }
 0x4c3   : > { %1556 = vmatprep.subr.bf16.mxu1 %v1753_v26 }
 0x4dd   : > { %v771_v51 = vpop.xlane.xlu1 %770 }
 0x4de   : > { %1682 = vrcp.f32 %v771_v51  ;;  %v1656_v51 = vld [vmem:[%s2156_s8 + $0x50] sm:$0xff]  }
 0x4df   : > { %1684 = vrcp.f32 %v881_v37  ;;  %v1652_v37 = vld [vmem:[%s2156_s8 + $0x40] sm:$0xff]  }
 0x4e1   : > { %v886_v54 = vpop.permute.xlu1 %885 }
 0x4e2   : > { %v891_v57 = vsel %vm557_vm3, %v886_v54, 0  ;;  %v1659_v54 = vld [vmem:[%s2156_s8 + $0x18] sm:$0xff]  }
 0x4e8   : > { %v1683_v52 = vpop.eup %1682 }
 0x4e9   : > { %v773_v53 = vmul.f32 %v1683_v52, %v1677_v35  ;;  %v1685_v56 = vpop.eup %1684  ;;  %v1657_v52 = vld [vmem:[%s2156_s8 + $0x10] sm:$0xff]  }
 0x4ea   : > { %v883_v58 = vmul.f32 %v1685_v56, %v1675_v30  ;;  %v1661_v56 = vld [vmem:[%s2156_s8 + $0x20] sm:$0xff]  }
 0x4eb   : > { %v774_v55 = vpack.c.bf16 %v773_v53, %v773_v53  ;;  %v1658_v53 = vld [vmem:[%s2156_s8 + $0x58] sm:$0xff]  }
 0x4ec   : > { %v884_v59 = vpack.c.bf16 %v883_v58, %v883_v58  ;;  %v1663_v58 = vld [vmem:[%s2156_s8 + $0x28] sm:$0xff]  }
 0x4ed   : > { %1547 = vmatmul.mubr.msk.bf16.vlgmr.msra.gmra.mrb[16].mxu1 %vm541_vm5, %v774_v55  ;;  %v1660_v55 = vld [vmem:[%s2156_s8 + $0x60] sm:$0xff]  }
 0x4ee   : > { %1557 = vmatpush3.bf16.msra.mxu1 %v891_v57  ;;  %1558 = vmatprep.mubr.msk.bf16.mxu1 %vm1754_vm1, %v1753_v26  ;;  %v1662_v57 = vld [vmem:[%s2156_s8 + $0x68] sm:$0xff]  }
 0x4f5   : > { %1559 = vmatmul.mubr.msk.bf16.vlgmr.msra.gmra.mrb[20].mxu1 %vm541_vm5, %v884_v59 }
 0x4f6   : > { %1146 = vmatprep.mubr.bf16.mxu1 %v1752_v11  ;;  %v1637_v11 = vld [vmem:[%s2152_s4 + $0x8] sm:$0xff]  }
 0x4f7   : > { %1565 = vmatpush3.bf16.msra.mxu0 %v1637_v11  ;;  %v1666_v11 = vld [vmem:[%s2156_s8 + $0x78] sm:$0xff]  }
 0x4f8   : > { %1566 = vmatprep.subr.bf16.mxu0 %v1753_v26 }
 0x4fb   : > { %1567 = vmatpush3.bf16.msra.mxu0 %v1638_v6  ;;  %v1059_v6 = vld [vmem:[%s2155_s7] sm:$0x3] }
 0x4fc   : > { %1568 = vmatprep.subr.bf16.mxu0 %v1753_v26 }
 0x4ff   : > { %1569 = vmatpush3.bf16.msra.mxu0 %v1639_v7  ;;  %v1067_v7 = vsub.s32 1, %v1953_v48 }
 0x500   : > { %1492 = vmatprep.subr.bf16.mxu0 %v1652_v37 }
 0x58b   : > { %v595_v61 = vpop.f32.mrb[8].mxu1 }
 0x58c   : > { %v1524_v62 = vpop.f32.mrb[9].mxu1 }
 0x58d   : > { %v598_v63 = vpop.f32.mrb[10].mxu1 }
 0x58e   : > { %v1525_v1 = vpop.f32.mrb[11].mxu1 }
 0x593   : > { %v707_v2 = vpop.f32.mrb[12].mxu1 }
 0x594   : > { %934 = vrot.lane.b32.xlu1 %v707_v2, %s1760_s18  ;;  %v1536_v3 = vpop.f32.mrb[13].mxu1  ;;  %s1468_s18 = sshll.u32 %s1840_s17, 7  ;;  %s1763_s17 = smov [#allocation2]  }
 0x595   : > { %v710_v4 = vpop.f32.mrb[14].mxu1  ;;  %s2105_s27 = scalar_lea.hbm %s2158_s10, %s1468_s18 }
 0x596   : > { %v1537_v5 = vpop.f32.mrb[15].mxu1  ;;  %v1664_v4 = vld [vmem:[%s2156_s8 + $0x70] sm:$0xff]  }
 0x597   : > { %v1665_v5 = vld [vmem:[%s2156_s8 + $0x30] sm:$0xff]  }
 0x5c0   : > { %v817_v8 = vpop.f32.mrb[16].mxu1 }
 0x5c1   : > { %938 = vrot.lane.b32.xlu0 %v817_v8, %s1758_s11  ;;  %v1548_v9 = vpop.f32.mrb[17].mxu1 }
 0x5c2   : > { %v820_v10 = vpop.f32.mrb[18].mxu1  ;;  %v1068_v9 = vrot.slane %v1059_v6, %v1067_v7 }
 0x5c3   : > { %v1549_v12 = vpop.f32.mrb[19].mxu1 }
 0x5c8   : > { %v927_v13 = vpop.f32.mrb[20].mxu1 }
 0x5c9   : > { %942 = vrot.lane.b32.xlu1 %v927_v13, %s1757_s30  ;;  %v1560_v14 = vpop.f32.mrb[21].mxu1  ;;  %s350_s30 = scalar_lea.vmem [#allocation2], %s1414_s12  ;;  %s1692_s12 = sshll.u32 %s1763_s17, 4  ;;  %s1693_s12 = int_to_ptr.vmem [resolvable:$false] %s1692_s12 }
 0x5ca   : > { %v930_v15 = vpop.f32.mrb[22].mxu1  ;;  %s1351_s21 = sshll.u32 %s350_s30, 4  ;;  %s1694_s11 = scalar_lea.vmem %s1693_s12, 256  ;;  %s2107_s21 = int_to_ptr.vmem [resolvable:$true] %s1351_s21 }
 0x5cb   : > { %v1561_v16 = vpop.f32.mrb[23].mxu1  ;;  %s1688_s20 = scalar_lea.vmem %s2107_s21, 128  ;;  %p1695_p0 = scmp.lt.s32.totalorder %s2107_s21, %s1693_s12 }
 0x5cc   : > { %p1689_p11 = scmp.ne.s32.totalorder %s2107_s21, %s1688_s20  ;;  %p1696_p1 = scmp.lt.s32.totalorder %s1694_s11, %s1688_s20 }
 0x5ce   : > { %p1690_p12 = pnand %p1689_p11, %p1857_p5  ;;  %p1697_p2 = por %p1696_p1, %p1695_p0 }
 0x5d0   : > { %p1691_p13 = pneg %p1690_p12 }
 0x5d2   : > { %p1698_p3 = pnand %p1697_p2, %p1691_p13 }
 0x606   : > { %v935_v17 = vpop.permute.xlu1 %934 }
 0x607   : > { %v945_v18 = vsel %vm494_vm2, %v595_v61, %v935_v17 }
 0x633   : > { %v939_v26 = vpop.permute.xlu0 %938 }
 0x634   : > { %v947_v19 = vsel %vm946_vm6, %v945_v18, %v939_v26 }
 0x63b   : > { %v943_v21 = vpop.permute.xlu1 %942 }
 0x63c   : > { %v949_v23 = vsel %vm948_vm7, %v947_v19, %v943_v21 }
 0x63d   : > { %v950_v24 = vpack.c.bf16 %v949_v23, %v949_v23 }
 0x63f   : > { %1571 = vmatmul.mubr.msk.bf16.vlgmr.msra.gmra.mrb[12].mxu0 %vm365_vm0, %v950_v24 }
 0x640   : > { %1493 = vmatpush3.bf16.msra.mxu0 %v1653_v47 }
 0x641   : > { %1494 = vmatprep.subr.bf16.mxu0 %v1654_v49 }
 0x644   : > { %1495 = vmatpush3.bf16.msra.mxu0 %v1655_v50 }
 0x645   : > { %1496 = vmatprep.subr.bf16.mxu0 %v1656_v51 }
 0x648   : > { %1497 = vmatpush3.bf16.msra.mxu0 %v1657_v52 }
 0x649   : > { %1498 = vmatprep.subr.bf16.mxu0 %v1658_v53 }
 0x64c   : > { %1499 = vmatpush3.bf16.msra.mxu0 %v1659_v54 }
 0x64d   : > { %1500 = vmatprep.subr.bf16.mxu0 %v1660_v55 }
 0x650   : > { %1501 = vmatpush3.bf16.msra.mxu0 %v1661_v56 }
 0x651   : > { %1502 = vmatprep.subr.bf16.mxu0 %v1662_v57 }
 0x654   : > { %1503 = vmatpush3.bf16.msra.mxu0 %v1663_v58 }
 0x655   : > { %1504 = vmatprep.subr.bf16.mxu0 %v1664_v4 }
 0x658   : > { %1505 = vmatpush3.bf16.msra.mxu0 %v1665_v5 }
 0x659   : > { %1506 = vmatprep.subr.bf16.mxu0 %v1666_v11 }
 0x712   : > { %v1020_v25 = vpop.f32.mrb[12].mxu0 }
 0x713   : > { %v1026_v28 = vadd.f32 %v1020_v25, %v1872_v0  ;;  %v1572_v29 = vpop.f32.mrb[13].mxu0  ;;  %v1642_v0 = vld [vmem:[%s2154_s6 + $0x4] ss:$8 sps:$4 sm:$0xff]   ;;  %v1466_v25 = vld [vmem:[%s2157_s9] ss:$0 sm:$0xff] }
 0x714   : > { %v1023_v30 = vpop.f32.mrb[14].mxu0  ;;  %1114 = vmatprep.subr.bf16.mxu1 %v1642_v0 }
 0x715   : > { %v2010_v31 = vadd.f32 %v1440_v27, %v1026_v28  ;;  %v1573_v32 = vpop.f32.mrb[15].mxu0  ;;  %1115 = vmatpush1.bf16.msra.mxu1 %v1640_v40 }
 0x716   : > { %1116 = vmatprep.subr.bf16.mxu1 %v1645_v41 }
 0x717   : > { %v1035_v33 = vsel %vm365_vm0, %v2010_v31, 0.0 }
 0x718   : > { %1036 = vadd.xlane.f32.xlu0 %v1035_v33 }
 0x719   : > { %1117 = vmatpush1.bf16.msra.mxu1 %v1643_v42 }
 0x71a   : > { %1118 = vmatprep.subr.bf16.mxu1 %v1648_v43 }
 0x71d   : > { %1119 = vmatpush1.bf16.msra.mxu1 %v1646_v44 }
 0x71e   : > { %1120 = vmatprep.subr.bf16.mxu1 %v1651_v46 }
 0x721   : > { %1121 = vmatpush1.bf16.msra.mxu1 %v1649_v45 }
 0x7a5   : > { %v1037_v34 = vpop.xlane.xlu0 %1036 }
 0x7a6   : > { %v1038_v35 = vmul.f32 0.015625, %v1037_v34 }
 0x7a8   : > { %v1039_v36 = vsub.f32 %v2010_v31, %v1038_v35 }
 0x7aa   : > { %v1040_v38 = vmul.f32 %v1039_v36, %v1039_v36 }
 0x7ac   : > { %v1041_v39 = vsel %vm365_vm0, %v1040_v38, 0.0 }
 0x7ad   : > { %1042 = vadd.xlane.f32.xlu1 %v1041_v39 }
 0x83a   : > { %v1043_v59 = vpop.xlane.xlu1 %1042 }
 0x83b   : > { %v1044_v60 = vmul.f32 0.015625, %v1043_v59 }
 0x83d   : > { %v1045_v61 = vadd.f32 1e-05, %v1044_v60 }
 0x83f   : > { %1686 = vrsqrt.f32 %v1045_v61 }
 0x849   : > { %v1687_v62 = vpop.eup %1686 }
 0x84a   : > { %v1047_v63 = vmul.f32 %v1687_v62, %v1039_v36 }
 0x84c   : > { %v1048_v1 = vmul.f32 %v1906_v20, %v1047_v63  ;;  %v1667_v20 = vld [vmem:[%s2156_s8 + $0x38] sm:$0xff]  }
 0x84d   : > { %1507 = vmatpush3.bf16.msra.mxu0 %v1667_v20 }
 0x84e   : > { %v1049_v2 = vadd.f32 %v1911_v22, %v1048_v1  ;;  %v1063_v22 = vsub.s32 0, %v1953_v48 }
 0x850   : > { %v1050_v3 = vpack.c.bf16 %v1049_v2, %v1049_v2  ;;  %v1064_v8 = vrot.slane %v1059_v6, %v1063_v22 }
 0x852   : > { %1449 = vmatmul.mubr.msk.bf16.vlgmr.msra.gmra.mrb[24].mxu1 %vm365_vm0, %v1050_v3 }
 0x925   : > { %v1148_v10 = vpop.f32.mrb[24].mxu1 }
 0x926   : > { %v1149_v12 = vadd.f32 %v1148_v10, %v1064_v8  ;;  %v1150_v13 = vpop.f32.mrb[25].mxu1 }
 0x927   : > { %v1151_v14 = vadd.f32 %v1150_v13, %v1068_v9  ;;  %v1152_v15 = vpop.f32.mrb[26].mxu1 }
 0x928   : > { %v1155_v16 = vmax.f32 %v1149_v12, 0.0  ;;  %v1153_v17 = vpop.f32.mrb[27].mxu1 }
 0x929   : > { %v1156_v26 = vmax.f32 %v1151_v14, 0.0 }
 0x92a   : > { %v1157_v19 = vpack.c.bf16 %v1155_v16, %v1155_v16 }
 0x92b   : > { %v1158_v18 = vpack.c.bf16 %v1156_v26, %v1156_v26 }
 0x92d   : > { %1319 = vmatprep.mubr.bf16.mxu0 %v1158_v18 }
 0x92e   : > { %1320 = vmatmul.mubr.bf16.vlgmr.msra.gmra.mrb[16].mxu0 %v1157_v19 }
 0xa01   : > { %v1508_v21 = vpop.f32.mrb[16].mxu0 }
 0xa02   : > { %v1509_v23 = vpop.f32.mrb[17].mxu0 }
 0xa03   : > { %v1510_v48 = vadd.f32 %v1509_v23, %v1508_v21  ;;  %v1511_v24 = vpop.f32.mrb[18].mxu0 }
 0xa04   : > { %v1512_v27 = vpop.f32.mrb[19].mxu0 }
 0xa05   : > { %v1327_v28 = vadd.f32 %v1510_v48, %v2010_v31 }
 0xa07   : > { %v1335_v29 = vadd.f32 %v1466_v25, %v1327_v28 }
 0xa09   : > { %1336 = vst.msk [vmem:[%s350_s30] sm:$0xff] %vm365_vm0, %v1335_v29 }
 0xa0a   : > { %1701 = shalt.err (!%p1698_p3)
}
 0xa0b   : > { %s1702_s29 = scalar_lea.hbm %s2105_s27, 128  ;;  %s1706_s25 = scalar_lea.hbm %s2158_s10, 256 }
 0xa0c   : > { %p1703_p4 = scmp.ne.s32.totalorder %s2105_s27, %s1702_s29  ;;  %p1707_p9 = scmp.lt.u32.totalorder %s2105_s27, %s2158_s10 }
 0xa0d   : > { %p1708_p10 = scmp.lt.u32.totalorder %s1706_s25, %s1702_s29  ;;  %p1710_p12 = scmp.lt.u32.totalorder %s1702_s29, %s2105_s27 }
 0xa0e   : > { %p1704_p7 = pnand %p1703_p4, %p1857_p5 }
 0xa0f   : > { %p1709_p11 = por %p1708_p10, %p1707_p9 }
 0xa10   : > { %p1705_p8 = pneg %p1704_p7 }
 0xa11   : > { %p1711_p13 = por %p1710_p12, %p1709_p11 }
 0xa13   : > { %p1712_p0 = pnand %p1711_p13, %p1705_p8 }
 0xa15   : > { %1715 = shalt.err (!%p1712_p0)
}
 0xa16   : > { %1574 = dma.vmem_to_hbm [thread:$0]  (%p1857_p5), %s2107_s21, 128, %s2105_s27, %s1338_s28  }
 0xa17 PF: > { %p1580_p1 = scmp.ge.s32.totalorder %s1750_s16, 2  ;;  %s1363_s20 = sand.u32 1, %s1738_s13  }
 0xa18   : > { %s1364_s12 = scalar_lea.sflag [#allocation3], %s1363_s20 }
 0xa19   : > { %p1577_p2 = pnand %p1580_p1, %p1861_p6 }
 0xa1b   : > { %1733 = dma.done.wait (!%p1577_p2), %s1364_s12, 128  }
 0xa1c   : > { %1735 = vsyncadd (!%p1577_p2), %s1364_s12, 4294967168  ;;  %p20_p3 = scmp.ge.s32.totalorder %s1844_s19, 4   ;;  %s2161_s13 = smov %s1742_s14 }
 0xa1d   : > { %s2162_s14 = smov %s1746_s15  ;;  %s2163_s15 = smov %s1855_s22 }
 0xa1e   : > { %s2164_s16 = smov %s1844_s19  ;;  %22 = sbr.rel (!%p20_p3) target bundleno = 3 (0x3), region = 95 }
 0xa25   :  { %1369 = vsyncpa [#allocation3], 1 }
 0xa26   :  { %1371 = vsyncpa [#allocation3 + $0x1], 1 }

</bundles_post_ra>
